<compile_context>
chip_gen: v5e
topology: v5e:2x2
jax: 0.10.0
libtpu: 0.0.40
codegen_flags: <defaults>
</compile_context>

<pallas_src>
import jax
import jax.numpy as jnp
from jax.experimental import pallas as pl
from jax.experimental.pallas import tpu as pltpu

H = 2          # LSTM hidden size
GW = 3 * H     # live-gate width [i | g | o]

# Column offsets of the blocks inside the packed (8, 128) parameter tile.
C_WB0, C_WB1 = 0, 8                 # (2, GW) each: W[:, k] lane-broadcast
C_WG0, C_WG1, C_WG2 = 16, 24, 32    # (1, GW) each: rows of wg2_t
C_BGF = 40                          # (2, GW)      folded gate bias
C_WF0, C_WF1 = 48, 56               # (2, 2) each: rows of fused final weight
C_BFF = 64                          # (2, 2)       fused final bias


# ------------------------------ Pallas kernel ------------------------------ #

def _fused_forward_kernel(x1_ref, p_ref, out_ref):
    # x1_ref: (6,) f32 in SMEM  -- row-major view of x1[0] (3, 2): x1[c,k] = x1_ref[2c+k]
    # p_ref : (8, 128) f32 in VMEM -- packed weights (see init_params)
    # out_ref: (2, 2) f32 in VMEM  -- v8 (batch-major), reshaped to (2,2,1) on host

    # D_k[j] = sum_c x1[c, k] * wg2_t[c, j]  -> (1, GW),  k = 0, 1
    # (this is (x1^T @ wg2_t) computed without transposing x1: scalar * row-vector)
    wgr0 = p_ref[0:1, C_WG0:C_WG0 + GW]
    wgr1 = p_ref[0:1, C_WG1:C_WG1 + GW]
    wgr2 = p_ref[0:1, C_WG2:C_WG2 + GW]
    d0 = x1_ref[0] * wgr0 + x1_ref[2] * wgr1 + x1_ref[4] * wgr2
    d1 = x1_ref[1] * wgr0 + x1_ref[3] * wgr1 + x1_ref[5] * wgr2

    # gates = (W @ x1^T) @ wg2_t + folded bias   -> (2, GW)
    # (shared-linear bias already folded into C_BGF)
    gates = (p_ref[0:2, C_WB0:C_WB0 + GW] * d0
             + p_ref[0:2, C_WB1:C_WB1 + GW] * d1
             + p_ref[0:2, C_BGF:C_BGF + GW])

    # torch.nn.LSTMCell with zero (h0, c0):  c = i*g ;  h = o*tanh(c)
    # (forget gate * c0 == 0 and W_hh @ h0 == 0 are dropped)
    i = jax.nn.sigmoid(gates[:, 0:H])
    g = jnp.tanh(gates[:, H:2 * H])
    o = jax.nn.sigmoid(gates[:, 2 * H:3 * H])
    h2 = o * jnp.tanh(i * g)                                   # (2, 2)

    # Fused trailing linears:  v8 = h2 @ (W^T W1^T) + (b W1^T + b1)
    out_ref[...] = (h2[:, 0:1] * p_ref[0:2, C_WF0:C_WF0 + 2]
                    + h2[:, 1:2] * p_ref[0:2, C_WF1:C_WF1 + 2]
                    + p_ref[0:2, C_BFF:C_BFF + 2])


# ------------------------------ parameters --------------------------------- #

def _uniform(key, shape, fan_in):
    bound = 1.0 / float(fan_in) ** 0.5
    return jax.random.uniform(key, shape, jnp.float32, -bound, bound)


def _init_lstm_cell(key, input_size, hidden_size):
    """torch.nn.LSTMCell-style init; returns raw w_ih and combined bias."""
    kk = jax.random.split(key, 4)
    Hs, I = hidden_size, input_size
    w_ih = _uniform(kk[0], (4 * Hs, I), Hs)        # rows ordered [i; f; g; o]
    # w_hh (kk[1]) is dead: it only multiplies the zero initial h0.
    b = _uniform(kk[2], (4 * Hs,), Hs) + _uniform(kk[3], (4 * Hs,), Hs)
    return w_ih, b


def init_params(key):
    # TODO(synk): torch re-creates the LSTMCells with fresh random weights on
    # every forward(); here they are fixed deterministic parameters.
    ks = jax.random.split(key, 6)
    W = _uniform(ks[0], (2, 2), 2)
    b = _uniform(ks[1], (2,), 2)
    W1 = _uniform(ks[2], (2, 2), 2)
    b1 = _uniform(ks[3], (2,), 2)
    # ks[4] belonged to lstm1 (the dead x0 branch) -- branch deleted.
    w_ih2, b2 = _init_lstm_cell(ks[5], 3, H)

    # Live gates [i | g | o] only (forget gate is dead: c0 == 0).
    wi, wg, wo = w_ih2[0:H], w_ih2[2 * H:3 * H], w_ih2[3 * H:4 * H]
    bi, bg_, bo = b2[0:H], b2[2 * H:3 * H], b2[3 * H:4 * H]
    wg2_t = jnp.concatenate([wi.T, wg.T, wo.T], axis=1)           # (3, GW)
    bg2 = jnp.concatenate([bi, bg_, bo])                          # (GW,)

    # Fold the shared-linear bias into the gate bias:
    #   gates = (W @ x1^T) @ wg2_t + bgf,  bgf[r,:] = b[r]*colsum(wg2_t) + bg2
    bgf = b.reshape(2, 1) * jnp.sum(wg2_t, axis=0, keepdims=True) + bg2.reshape(1, GW)
    # Pre-compose the two trailing linears:  v8 = h2 @ Wf + bf
    Wf = W.T @ W1.T                                               # (2, 2)
    bf = b.reshape(1, 2) @ W1.T + b1.reshape(1, 2)                # (1, 2)

    # Pack everything the kernel needs into ONE (8, 128) f32 tile -> single DMA.
    P = jnp.zeros((8, 128), jnp.float32)
    P = P.at[0:2, C_WB0:C_WB0 + GW].set(jnp.broadcast_to(W[:, 0:1], (2, GW)))
    P = P.at[0:2, C_WB1:C_WB1 + GW].set(jnp.broadcast_to(W[:, 1:2], (2, GW)))
    P = P.at[0:1, C_WG0:C_WG0 + GW].set(wg2_t[0:1, :])
    P = P.at[0:1, C_WG1:C_WG1 + GW].set(wg2_t[1:2, :])
    P = P.at[0:1, C_WG2:C_WG2 + GW].set(wg2_t[2:3, :])
    P = P.at[0:2, C_BGF:C_BGF + GW].set(bgf)
    P = P.at[0:2, C_WF0:C_WF0 + 2].set(jnp.broadcast_to(Wf[0:1, :], (2, 2)))
    P = P.at[0:2, C_WF1:C_WF1 + 2].set(jnp.broadcast_to(Wf[1:2, :], (2, 2)))
    P = P.at[0:2, C_BFF:C_BFF + 2].set(jnp.broadcast_to(bf, (2, 2)))

    return {
        "packed": P,
        # raw params kept only for the pure-JAX reference check in __main__
        "W": W, "b": b, "W1": W1, "b1": b1,
        "lstm2_w_ih": w_ih2, "lstm2_b": b2,
    }


# ------------------------------- forward ----------------------------------- #

def forward(x0, x1, params):
    # TODO(synk): the x0 branch (linear -> lstm1 -> transposes) is dead code in
    # the original module (v1/v2/v3 never reach the output); it is removed so
    # its inputs are never DMA'd.
    del x0
    x1_flat = x1.reshape(6).astype(jnp.float32)     # free reshape; x1[c,k] -> 2c+k

    out2d = pl.pallas_call(
        _fused_forward_kernel,
        out_shape=jax.ShapeDtypeStruct((2, 2), jnp.float32),
        in_specs=[pl.BlockSpec(memory_space=pltpu.MemorySpace.SMEM),
                  pl.BlockSpec(memory_space=pltpu.MemorySpace.VMEM)],
        out_specs=pl.BlockSpec(memory_space=pltpu.MemorySpace.VMEM),
    )(x1_flat, params["packed"])

    # v8.permute(0, 2, 1): (2,1,2) -> (2,2,1) is a pure reshape (middle dim is 1).
    # TODO(synk): the original's .permute(0,2,1) before linear1 is omitted (it
    # would make linear1's in_features shape-invalid in torch as well).
    return out2d.reshape(2, 2, 1)


# --------------------------- pure-JAX reference ----------------------------- #

def _reference_forward(x1, params):
    """Unfused reference of the live dataflow (full 4-gate LSTM, zero state)."""
    W, b, W1, b1 = params["W"], params["b"], params["W1"], params["b1"]
    w_ih, bsum = params["lstm2_w_ih"], params["lstm2_b"]
    x = x1.reshape(3, 2).astype(jnp.float32)
    v4 = (x @ W.T + b).T                             # linear + permute(0,2,1) -> (2, 3)
    gates = v4 @ w_ih.T + bsum                       # (2, 4H), torch order [i|f|g|o]
    i = jax.nn.sigmoid(gates[:, 0:H])
    f = jax.nn.sigmoid(gates[:, H:2 * H])
    g = jnp.tanh(gates[:, 2 * H:3 * H])
    o = jax.nn.sigmoid(gates[:, 3 * H:4 * H])
    c = f * jnp.zeros((2, H), jnp.float32) + i * g   # c0 == 0
    h = o * jnp.tanh(c)                              # (2, 2)
    v7 = h @ W.T + b
    v8 = v7 @ W1.T + b1
    return v8.reshape(2, 2, 1)


# --------------------------------- main ------------------------------------ #

if __name__ == "__main__":
    key = jax.random.PRNGKey(0)
    k0, k1, kp = jax.random.split(key, 3)
    x0 = jax.random.normal(k0, (1, 3, 2), dtype=jnp.float32)
    x1 = jax.random.normal(k1, (1, 3, 2), dtype=jnp.float32)
    params = init_params(kp)

    fwd = jax.jit(forward)
    out = jax.block_until_ready(fwd(x0, x1, params))
    assert out.shape == (2, 2, 1) and out.dtype == jnp.float32

    ref = _reference_forward(x1, params)
    assert jnp.allclose(out, ref, rtol=1e-4, atol=1e-5), (out, ref)

    print("KERNEL_OK")
</pallas_src>

<mosaic_0001>
module attributes {stable_mosaic.version = 11 : i64} {
  func.func @_fused_forward_kernel(%arg0: memref<6xf32, #tpu.memory_space<smem>>, %arg1: memref<8x128xf32, #tpu.memory_space<vmem>>, %arg2: memref<2x2xf32, #tpu.memory_space<vmem>>) attributes {dimension_semantics = [], scalar_prefetch = 0 : i64, scratch_operands = 0 : i64, tpu.core_type = #tpu.core_type<tc>} {
    %c0 = arith.constant 0 : index
    %c16 = arith.constant 16 : index
    %0 = vector.load %arg1[%c0, %c16] : memref<8x128xf32, #tpu.memory_space<vmem>>, vector<1x6xf32>
    %c0_0 = arith.constant 0 : index
    %c24 = arith.constant 24 : index
    %1 = vector.load %arg1[%c0_0, %c24] : memref<8x128xf32, #tpu.memory_space<vmem>>, vector<1x6xf32>
    %c0_1 = arith.constant 0 : index
    %c32 = arith.constant 32 : index
    %2 = vector.load %arg1[%c0_1, %c32] : memref<8x128xf32, #tpu.memory_space<vmem>>, vector<1x6xf32>
    %c0_2 = arith.constant 0 : index
    %3 = memref.load %arg0[%c0_2] : memref<6xf32, #tpu.memory_space<smem>>
    %4 = vector.broadcast %3 : f32 to vector<1x6xf32>
    %5 = arith.mulf %4, %0 : vector<1x6xf32>
    %c2 = arith.constant 2 : index
    %6 = memref.load %arg0[%c2] : memref<6xf32, #tpu.memory_space<smem>>
    %7 = vector.broadcast %6 : f32 to vector<1x6xf32>
    %8 = arith.mulf %7, %1 : vector<1x6xf32>
    %9 = arith.addf %5, %8 : vector<1x6xf32>
    %c4 = arith.constant 4 : index
    %10 = memref.load %arg0[%c4] : memref<6xf32, #tpu.memory_space<smem>>
    %11 = vector.broadcast %10 : f32 to vector<1x6xf32>
    %12 = arith.mulf %11, %2 : vector<1x6xf32>
    %13 = arith.addf %9, %12 : vector<1x6xf32>
    %c1 = arith.constant 1 : index
    %14 = memref.load %arg0[%c1] : memref<6xf32, #tpu.memory_space<smem>>
    %15 = vector.broadcast %14 : f32 to vector<1x6xf32>
    %16 = arith.mulf %15, %0 : vector<1x6xf32>
    %c3 = arith.constant 3 : index
    %17 = memref.load %arg0[%c3] : memref<6xf32, #tpu.memory_space<smem>>
    %18 = vector.broadcast %17 : f32 to vector<1x6xf32>
    %19 = arith.mulf %18, %1 : vector<1x6xf32>
    %20 = arith.addf %16, %19 : vector<1x6xf32>
    %c5 = arith.constant 5 : index
    %21 = memref.load %arg0[%c5] : memref<6xf32, #tpu.memory_space<smem>>
    %22 = vector.broadcast %21 : f32 to vector<1x6xf32>
    %23 = arith.mulf %22, %2 : vector<1x6xf32>
    %24 = arith.addf %20, %23 : vector<1x6xf32>
    %c0_3 = arith.constant 0 : index
    %c0_4 = arith.constant 0 : index
    %25 = vector.load %arg1[%c0_3, %c0_4] : memref<8x128xf32, #tpu.memory_space<vmem>>, vector<2x6xf32>
    %26 = vector.broadcast %13 : vector<1x6xf32> to vector<2x6xf32>
    %27 = arith.mulf %25, %26 : vector<2x6xf32>
    %c0_5 = arith.constant 0 : index
    %c8 = arith.constant 8 : index
    %28 = vector.load %arg1[%c0_5, %c8] : memref<8x128xf32, #tpu.memory_space<vmem>>, vector<2x6xf32>
    %29 = vector.broadcast %24 : vector<1x6xf32> to vector<2x6xf32>
    %30 = arith.mulf %28, %29 : vector<2x6xf32>
    %31 = arith.addf %27, %30 : vector<2x6xf32>
    %c0_6 = arith.constant 0 : index
    %c40 = arith.constant 40 : index
    %32 = vector.load %arg1[%c0_6, %c40] : memref<8x128xf32, #tpu.memory_space<vmem>>, vector<2x6xf32>
    %33 = arith.addf %31, %32 : vector<2x6xf32>
    %34 = vector.extract_strided_slice %33 {offsets = [0, 0], sizes = [2, 2], strides = [1, 1]} : vector<2x6xf32> to vector<2x2xf32>
    %35 = arith.negf %34 : vector<2x2xf32>
    %36 = math.exp %35 : vector<2x2xf32>
    %cst = arith.constant 1.000000e+00 : f32
    %37 = vector.broadcast %cst : f32 to vector<2x2xf32>
    %38 = arith.addf %37, %36 : vector<2x2xf32>
    %39 = arith.divf %37, %38 : vector<2x2xf32>
    %40 = vector.extract_strided_slice %33 {offsets = [0, 2], sizes = [2, 2], strides = [1, 1]} : vector<2x6xf32> to vector<2x2xf32>
    %41 = math.tanh %40 : vector<2x2xf32>
    %42 = vector.extract_strided_slice %33 {offsets = [0, 4], sizes = [2, 2], strides = [1, 1]} : vector<2x6xf32> to vector<2x2xf32>
    %43 = arith.negf %42 : vector<2x2xf32>
    %44 = math.exp %43 : vector<2x2xf32>
    %cst_7 = arith.constant 1.000000e+00 : f32
    %45 = vector.broadcast %cst_7 : f32 to vector<2x2xf32>
    %46 = arith.addf %45, %44 : vector<2x2xf32>
    %47 = arith.divf %45, %46 : vector<2x2xf32>
    %48 = arith.mulf %39, %41 : vector<2x2xf32>
    %49 = math.tanh %48 : vector<2x2xf32>
    %50 = arith.mulf %47, %49 : vector<2x2xf32>
    %51 = vector.extract_strided_slice %50 {offsets = [0, 0], sizes = [2, 1], strides = [1, 1]} : vector<2x2xf32> to vector<2x1xf32>
    %c0_8 = arith.constant 0 : index
    %c48 = arith.constant 48 : index
    %52 = vector.load %arg1[%c0_8, %c48] : memref<8x128xf32, #tpu.memory_space<vmem>>, vector<2x2xf32>
    %53 = vector.broadcast %51 : vector<2x1xf32> to vector<2x2xf32>
    %54 = arith.mulf %53, %52 : vector<2x2xf32>
    %55 = vector.extract_strided_slice %50 {offsets = [0, 1], sizes = [2, 1], strides = [1, 1]} : vector<2x2xf32> to vector<2x1xf32>
    %c0_9 = arith.constant 0 : index
    %c56 = arith.constant 56 : index
    %56 = vector.load %arg1[%c0_9, %c56] : memref<8x128xf32, #tpu.memory_space<vmem>>, vector<2x2xf32>
    %57 = vector.broadcast %55 : vector<2x1xf32> to vector<2x2xf32>
    %58 = arith.mulf %57, %56 : vector<2x2xf32>
    %59 = arith.addf %54, %58 : vector<2x2xf32>
    %c0_10 = arith.constant 0 : index
    %c64 = arith.constant 64 : index
    %60 = vector.load %arg1[%c0_10, %c64] : memref<8x128xf32, #tpu.memory_space<vmem>>, vector<2x2xf32>
    %61 = arith.addf %59, %60 : vector<2x2xf32>
    %c0_11 = arith.constant 0 : index
    %c0_12 = arith.constant 0 : index
    %62 = vector.load %arg2[%c0_11, %c0_12] : memref<2x2xf32, #tpu.memory_space<vmem>>, vector<2x2xf32>
    tpu.vector_store %arg2[%c0_11, %c0_12], %61 {strides = array<i32>} : memref<2x2xf32, #tpu.memory_space<vmem>>, vector<2x2xf32>,
    return
  }
}

</mosaic_0001>

<bundles_post_ra>
// kernel: forward.1
= control target key start
LH: loop header
LB: loop body
LE: loop exit
PB: predicated region body
PF: predicated region fallthrough
CT: control target
= control target key end

     0   :  { %7 = vsyncpa [#allocation4], 0  ;;  %s282_s0 = inlined_call_operand.vmem [shape: f32[6], index: 0, kind: input, shape index: {}]   ;;  %s283_s1 = inlined_call_operand.vmem [shape: f32[8,128], index: 1, kind: input, shape index: {}]   ;;  %s284_s2 = inlined_call_operand.hbm [shape: f32[2,2], index: 2, kind: output, shape index: {}]  }
   0x1   :  { %8 = vsyncpa [#allocation3], 0  ;;  %s14_s11 = sshll.u32 %s282_s0, 4  ;;  %s228_s12 = smov [#allocation2]   ;;  %s15_s11 = int_to_ptr.vmem [resolvable:$true] %s14_s11 }
   0x2   :  { %17 = dma.vmem_to_smem %s15_s11, 16, %s228_s12, [#allocation4]  }
   0x3   :  { %224 = dma.done.wait [#allocation4], 16  }
   0x4   :  { %225 = vsyncadd [#allocation4], 4294967280 }
   0x5   :  { %24 = sfence }
   0x6   :  { %s164_s13 = sld [smem:[#allocation2 + $0x3]]  ;;  %v25_v0 = vld [vmem:[%s283_s1] sm:$0x1]  ;;  %s229_s18 = smov 120   ;;  %v234_v49 = vmov 5   ;;  %v235_v50 = vmov 4  }
   0x7   :  { %s165_s14 = sld [smem:[#allocation2 + $0x5]]  ;;  %s230_s0 = smov 112   ;;  %v266_v9 = vld [vmem:[%s283_s1] sm:$0x3]  ;;  %177 = vset.pattern.permute.xlu1 %v234_v49  ;;  %178 = vset.pattern.permute.xlu2 %v235_v50  ;;  %vm142_vm4 = vcmask 9216  }
   0x8   :  { %s161_s15 = sld [smem:[#allocation2 + $0x2]]  ;;  %s231_s22 = smov 88   ;;  %179 = vset.pattern.permute.xlu0 %v234_v49 }
   0x9   :  { %s162_s19 = sld [smem:[#allocation2 + $0x4]]  ;;  %s232_s1 = smov 126  }
   0xa   :  { %s163_s23 = sld [smem:[#allocation2 + $0x1]]  ;;  %s233_s25 = smov 4  }
   0xb   :  { %s26_s24 = sld [smem:[#allocation2]]  ;;  %s236_s26 = smov 80  }
   0xc   :  { %v49_v1 = vstv %s164_s13  ;;  %s237_s27 = smov [#allocation5]   ;;  %s151_s3 = sshll.u32 %s284_s2, 4  ;;  %s152_s3 = int_to_ptr.hbm [resolvable:$true] %s151_s3 }
   0xd   :  { %v50_v2 = vmul.f32 %v49_v1, %v25_v0  ;;  %v57_v5 = vstv %s165_s14  ;;  %s149_s28 = sshll.u32 %s237_s27, 4  ;;  %s150_s28 = int_to_ptr.vmem [resolvable:$true] %s149_s28 }
   0xe   :  { %v30_v3 = vstv %s161_s15  ;;  %v58_v6 = vmul.f32 %v57_v5, %v25_v0 }
   0xf   :  { %52 = vrot.lane.b32.xlu0 %v50_v2, %s229_s18  ;;  %v31_v4 = vmul.f32 %v30_v3, %v25_v0  ;;  %v38_v7 = vstv %s162_s19 }
  0x10   :  { %v39_v8 = vmul.f32 %v38_v7, %v25_v0  ;;  %v46_v10 = vstv %s163_s23 }
  0x11   :  { %33 = vrot.lane.b32.xlu1 %v31_v4, %s229_s18  ;;  %v47_v12 = vmul.f32 %v46_v10, %v25_v0  ;;  %v27_v17 = vstv %s26_s24 }
  0x12   :  { %v28_v19 = vmul.f32 %v27_v17, %v25_v0 }
  0x17   :  { %60 = vrot.lane.b32.xlu0 %v58_v6, %s230_s0 }
  0x19   :  { %41 = vrot.lane.b32.xlu1 %v39_v8, %s230_s0 }
  0x21   :  { %83 = vrot.lane.b32.xlu1 %v266_v9, %s231_s22 }
  0x81   :  { %v53_v11 = vpop.permute.xlu0 %52 }
  0x82   :  { %v55_v13 = vadd.f32 %v53_v11, %v47_v12 }
  0x83   :  { %v34_v18 = vpop.permute.xlu1 %33 }
  0x84   :  { %v36_v20 = vadd.f32 %v34_v18, %v28_v19 }
  0x89   :  { %v61_v14 = vpop.permute.xlu0 %60 }
  0x8a   :  { %v63_v15 = vadd.f32 %v61_v14, %v55_v13 }
  0x8b   :  { %v42_v21 = vpop.permute.xlu1 %41 }
  0x8c   :  { %v71_v16 = vperm.slane %v63_v15, 0  ;;  %v44_v22 = vadd.f32 %v42_v21, %v36_v20 }
  0x8e   :  { %73 = vrot.lane.b32.xlu2 %v71_v16, %s229_s18  ;;  %v65_v23 = vperm.slane %v44_v22, 0 }
  0x93   :  { %v84_v29 = vpop.permute.xlu1 %83 }
  0x96   :  { %67 = vrot.lane.b32.xlu2 %v65_v23, %s230_s0 }
  0xe8   :  { %v74_v24 = vpop.permute.xlu2 %73 }
  0xe9   :  { %v76_v25 = vmul.f32 %v74_v24, %v266_v9 }
  0xeb   :  { %78 = vrot.lane.b32.xlu0 %v76_v25, %s229_s18 }
  0xf0   :  { %v68_v26 = vpop.permute.xlu2 %67 }
  0xf1   :  { %v70_v27 = vmul.f32 %v68_v26, %v266_v9 }
 0x15d   :  { %v79_v28 = vpop.permute.xlu0 %78 }
 0x15e   :  { %v81_v30 = vadd.f32 %v79_v28, %v70_v27 }
 0x160   :  { %v86_v31 = vadd.f32 %v84_v29, %v81_v30 }
 0x162   :  { %180 = vtanh.f32 %v86_v31  ;;  %v166_v33 = vmul.f32 -1.442695, %v86_v31 }
 0x164   :  { %182 = vpow2.f32 %v166_v33 }
 0x168   :  { %v181_v32 = vpop.eup %180 }
 0x169   :  { %108 = vrot.lane.b32.xlu2 %v181_v32, %s232_s1 }
 0x16a   :  { %v183_v34 = vpop.eup %182 }
 0x16b   :  { %v90_v35 = vadd.f32 1.0, %v183_v34 }
 0x16d   :  { %184 = vrcp.f32 %v90_v35  ;;  %v102_v41 = vand.u32 2147483648, %v90_v35  ;;  %vm96_vm1 = vweird.f32 %v90_v35  ;;  %v100_v42 = vand.u32 2147483647, %v90_v35 }
 0x16f   :  { %v103_v44 = vor.u32 1.1754944e-38, %v102_v41  ;;  %vm101_vm3 = vcmp.eq.f32.partialorder %v100_v42, 8.507059e+37 }
 0x173   :  { %v185_v36 = vpop.eup %184 }
 0x174   :  { %v92_v37 = vmul.f32 %v185_v36, %v90_v35  ;;  %vm97_vm0 = vweird.f32 %v185_v36 }
 0x175   :  { %vm98_vm2 = vmor %vm96_vm1, %vm97_vm0 }
 0x176   :  { %v93_v38 = vsub.f32 1.0, %v92_v37 }
 0x178   :  { %v94_v39 = vmul.f32 %v185_v36, %v93_v38 }
 0x17a   :  { %v95_v40 = vadd.f32 %v185_v36, %v94_v39 }
 0x17c   :  { %v99_v43 = vsel %vm98_vm2, %v185_v36, %v95_v40 }
 0x17d   :  { %v104_v46 = vsel %vm101_vm3, %v103_v44, %v99_v43 }
 0x1c3   :  { %v109_v45 = vpop.permute.xlu2 %108 }
 0x1c4   :  { %v111_v47 = vmul.f32 %v109_v45, %v104_v46 }
 0x1c6   :  { %186 = vtanh.f32 %v111_v47 }
 0x1cc   :  { %v187_v48 = vpop.eup %186 }
 0x1cd   :  { %114 = vrot.lane.b32.xlu0 %v187_v48, %s233_s25 }
 0x23f   :  { %v115_v51 = vpop.permute.xlu0 %114 }
 0x240   :  { %v117_v52 = vmul.f32 %v115_v51, %v104_v46 }
 0x242   :  { %120 = vperm.xlu2 %178, %v117_v52   ;;  %125 = vperm.xlu1 %177, %v117_v52  }
 0x24a   :  { %134 = vrot.lane.b32.xlu1 %v266_v9, %s230_s0 }
 0x29c   :  { %v121_v55 = vpop.permute.xlu2 %120 }
 0x29d   :  { %v123_v56 = vmul.f32 %v121_v55, %v266_v9 }
 0x2b4   :  { %v126_v53 = vpop.permute.xlu1 %125 }
 0x2b5   :  { %v128_v54 = vmul.f32 %v126_v53, %v266_v9 }
 0x2b7   :  { %130 = vrot.lane.b32.xlu0 %v128_v54, %s229_s18 }
 0x2bc   :  { %v135_v58 = vpop.permute.xlu1 %134 }
 0x329   :  { %v131_v57 = vpop.permute.xlu0 %130 }
 0x32a   :  { %v133_v59 = vadd.f32 %v131_v57, %v123_v56 }
 0x32c   :  { %v137_v60 = vadd.f32 %v135_v58, %v133_v59 }
 0x32e   :  { %139 = vrot.lane.b32.xlu2 %v137_v60, %s236_s26 }
 0x388   :  { %v140_v61 = vpop.permute.xlu2 %139 }
 0x389   :  { %143 = vst.msk [vmem:[#allocation5] sm:$0x3] %vm142_vm4, %v140_v61 }
 0x38a   :  { %154 = dma.vmem_to_hbm [thread:$0]  %s150_s28, 32, %s152_s3, [#allocation3]  }
 0x38b   :  { %226 = dma.done.wait [#allocation3], 32  }
 0x38c   :  { %227 = vsyncadd [#allocation3], 4294967264 }
 0x38d   :  { %159 = vsyncpa [#allocation3], 1 }
 0x38e   :  { %160 = vsyncpa [#allocation4], 1 }

</bundles_post_ra>
